<compile_context>
chip_gen: v7x
topology: tpu7x:2x2x1
jax: 0.10.0
libtpu: 0.0.40
codegen_flags: <defaults>
</compile_context>

<pallas_src>
import functools
import math

import jax
import jax.numpy as jnp
from jax import lax
from jax.experimental import pallas as pl
from jax.experimental.pallas import tpu as pltpu


def _round_up(a, b):
    return ((a + b - 1) // b) * b


def _layernorm_f32(y, gamma, beta, eps):
    mean = jnp.mean(y, axis=-1, keepdims=True)
    yc = y - mean
    var = jnp.mean(yc * yc, axis=-1, keepdims=True)
    return yc * lax.rsqrt(var + eps) * gamma + beta


def _device_vmem_bytes():
    try:
        return int(pltpu.get_tpu_info().vmem_capacity_bytes)
    except Exception:
        return 64 * 1024 * 1024  # conservative: v7x per-TensorCore VMEM


# ----------------------------------------------------------------------------
# Fast path: whole weight stack resident in VMEM, layer loop inside the kernel
# ----------------------------------------------------------------------------
def _resident_kernel(x_ref, w_ref, b_ref, g_ref, bt_ref, o_ref,
                     *, n_layers, apply_norm, ln_eps):
    """Grid = (M_tiles,).  W (L,H,H) and b (L,1,H) live in VMEM for all tiles."""
    x = x_ref[...].astype(jnp.float32)
    w_dtype = w_ref.dtype
    # Compile-time layer loop: static layer indices -> static slices, full
    # unroll (equivalent to lax.fori_loop(..., unroll=True) for a static L).
    for l in range(n_layers):
        w = w_ref[l]                                    # (H, H)   param dtype
        b = b_ref[l].astype(jnp.float32)                # (1, H)
        h = jnp.dot(x.astype(w_dtype), w,
                    preferred_element_type=jnp.float32) + b
        x = x + jax.nn.gelu(h, approximate=True)
    if apply_norm:
        x = _layernorm_f32(x, g_ref[...].astype(jnp.float32),
                           bt_ref[...].astype(jnp.float32), ln_eps)
    o_ref[...] = x.astype(o_ref.dtype)


# ----------------------------------------------------------------------------
# Fallback: weights streamed per layer along the grid, activation resident
# ----------------------------------------------------------------------------
def _streamed_kernel(x_ref, w_ref, b_ref, g_ref, bt_ref, o_ref, acc_ref,
                     *, apply_norm, ln_eps):
    """Grid = (M_tiles, L).  acc_ref holds the activation tile across layers."""
    l = pl.program_id(1)
    n_layers = pl.num_programs(1)

    @pl.when(l == 0)
    def _init():
        acc_ref[...] = x_ref[...].astype(jnp.float32)

    x = acc_ref[...]                                    # (tm, H) f32
    w = w_ref[0]                                        # (H, H)   streamed
    b = b_ref[l].astype(jnp.float32)                    # (1, H)   resident stack
    h = jnp.dot(x.astype(w_ref.dtype), w, preferred_element_type=jnp.float32) + b
    acc_ref[...] = x + jax.nn.gelu(h, approximate=True)

    @pl.when(l == n_layers - 1)
    def _finalize():
        y = acc_ref[...]
        if apply_norm:
            y = _layernorm_f32(y, g_ref[...].astype(jnp.float32),
                               bt_ref[...].astype(jnp.float32), ln_eps)
        o_ref[...] = y.astype(o_ref.dtype)


# ----------------------------------------------------------------------------
# CheckpointLayerStack forward (fused)
# ----------------------------------------------------------------------------
def checkpoint_layer_stack_forward(
    hidden_states,             # (B, S, H)
    layer_params,              # list of (W (H,H), b (1,H))
    norm_params=None,          # (gamma (1,H), beta (1,H)) or None
    *,
    enable_checkpoint=True,    # interface parity; forward-identical
    checkpoint_stride=1,       # interface parity; forward-identical
    tm=1024,                   # target row tile (auto-capped by VMEM / M)
    ln_eps=1e-5,
    param_dtype=jnp.bfloat16,  # bf16 weights by default; f32 accumulation
):
    del enable_checkpoint, checkpoint_stride  # forward math is unchanged

    B, S, H = hidden_states.shape
    M = B * S
    act_dtype = hidden_states.dtype
    act_bytes = jnp.dtype(act_dtype).itemsize

    # Stack per-layer params so one pallas_call sees them all.
    w_stack = jnp.stack([w for (w, _) in layer_params], axis=0)            # (L,H,H)
    b_stack = jnp.stack([b.reshape(1, H) for (_, b) in layer_params], 0)   # (L,1,H)
    if param_dtype is not None:
        w_stack = w_stack.astype(param_dtype)
        b_stack = b_stack.astype(param_dtype)
    L = w_stack.shape[0]
    w_bytes = jnp.dtype(w_stack.dtype).itemsize

    apply_norm = norm_params is not None
    if apply_norm:
        gamma, beta = norm_params
        gamma = gamma.reshape(1, H)
        beta = beta.reshape(1, H)
    else:
        gamma = jnp.ones((1, H), dtype=jnp.float32)
        beta = jnp.zeros((1, H), dtype=jnp.float32)

    vmem_cap = _device_vmem_bytes()

    # Resident-weight fast path if the (double-buffered) stack is small.
    w_stack_bytes = L * H * H * w_bytes + L * 8 * H * w_bytes  # W + padded b
    resident = (2 * w_stack_bytes) <= min(16 * 1024 * 1024, vmem_cap // 4)

    # ---- row tile selection (VMEM-aware, >=2 tiles for v7x megacore) ----
    per_row = H * (4 * act_bytes + (0 if resident else 4))
    fixed = ((2 * w_stack_bytes) if resident
             else 2 * (H * H + 8 * H) * w_bytes) + 4 * H * 4
    budget = int(vmem_cap * 0.6) - fixed
    tm_cap = max(8, (budget // max(per_row, 1)) // 8 * 8)
    tm_eff = max(8, min((int(tm) // 8) * 8, tm_cap, 2048))
    M_pad8 = _round_up(M, 8)
    if tm_eff >= M_pad8:
        # Split a single tile into two so the second TensorCore gets work.
        tm_eff = M_pad8 if M_pad8 < 16 else _round_up((M_pad8 + 1) // 2, 8)
    M_pad = _round_up(M, tm_eff)
    n_tiles = M_pad // tm_eff

    x2d = hidden_states.reshape(M, H)
    if M_pad != M:
        x2d = jnp.pad(x2d, ((0, M_pad - M), (0, 0)))

    # ---- device-aware VMEM limit ----
    est = (4 * tm_eff * H * act_bytes                    # x + out, double-buffered
           + fixed
           + (0 if resident else tm_eff * H * 4))        # f32 activation scratch
    vmem_limit = int(min(max(32 * 1024 * 1024, 2 * est),
                         vmem_cap - 8 * 1024 * 1024))
    vmem_limit = int(max(vmem_limit,
                         min(est + 4 * 1024 * 1024, vmem_cap - 4 * 1024 * 1024)))

    cost = pl.CostEstimate(
        flops=2 * M_pad * H * H * L,
        transcendentals=M_pad * H * L,
        bytes_accessed=(L * H * H * w_bytes * (1 if resident else n_tiles)
                        + 2 * M_pad * H * act_bytes),
    )

    if resident:
        kernel = functools.partial(_resident_kernel, n_layers=L,
                                   apply_norm=apply_norm, ln_eps=ln_eps)
        grid_spec = pltpu.PrefetchScalarGridSpec(
            num_scalar_prefetch=0,
            grid=(n_tiles,),
            in_specs=[
                pl.BlockSpec((tm_eff, H), lambda i: (i, 0)),    # x tile
                pl.BlockSpec((L, H, H), lambda i: (0, 0, 0)),   # full W stack
                pl.BlockSpec((L, 1, H), lambda i: (0, 0, 0)),   # full b stack
                pl.BlockSpec((1, H), lambda i: (0, 0)),         # gamma
                pl.BlockSpec((1, H), lambda i: (0, 0)),         # beta
            ],
            out_specs=pl.BlockSpec((tm_eff, H), lambda i: (i, 0)),
            scratch_shapes=[],
        )
        dim_sem = ("parallel",)
    else:
        # TODO(synk): for very large H on v7x (64 MiB VMEM) add an innermost
        # N-tile grid axis for W so the weight block stays double-buffered.
        kernel = functools.partial(_streamed_kernel,
                                   apply_norm=apply_norm, ln_eps=ln_eps)
        grid_spec = pltpu.PrefetchScalarGridSpec(
            num_scalar_prefetch=0,
            grid=(n_tiles, L),                                  # layer axis last
            in_specs=[
                pl.BlockSpec((tm_eff, H), lambda i, l: (i, 0)),   # x tile
                pl.BlockSpec((1, H, H), lambda i, l: (l, 0, 0)),  # W_l streamed
                pl.BlockSpec((L, 1, H), lambda i, l: (0, 0, 0)),  # b stack resident
                pl.BlockSpec((1, H), lambda i, l: (0, 0)),        # gamma
                pl.BlockSpec((1, H), lambda i, l: (0, 0)),        # beta
            ],
            out_specs=pl.BlockSpec((tm_eff, H), lambda i, l: (i, 0)),
            scratch_shapes=[pltpu.VMEM((tm_eff, H), jnp.float32)],
        )
        dim_sem = ("parallel", "arbitrary")

    out2d = pl.pallas_call(
        kernel,
        out_shape=jax.ShapeDtypeStruct((M_pad, H), act_dtype),
        grid_spec=grid_spec,
        compiler_params=pltpu.CompilerParams(
            dimension_semantics=dim_sem,
            vmem_limit_bytes=vmem_limit,
        ),
        cost_estimate=cost,
    )(x2d, w_stack, b_stack, gamma, beta)

    return out2d[:M].reshape(B, S, H)


# ----------------------------------------------------------------------------
# Pure-JAX reference (mirrors the kernel's param_dtype casting)
# ----------------------------------------------------------------------------
def _reference(hidden_states, layer_params, norm_params, ln_eps=1e-5,
               param_dtype=None):
    x = hidden_states.astype(jnp.float32)
    for w, b in layer_params:
        if param_dtype is not None:
            w = w.astype(param_dtype)
            b = b.astype(param_dtype)
            lhs = x.astype(param_dtype).astype(jnp.float32)
        else:
            lhs = x
        h = lhs @ w.astype(jnp.float32) + b.astype(jnp.float32)
        x = x + jax.nn.gelu(h, approximate=True)
    if norm_params is not None:
        gamma, beta = norm_params
        mean = jnp.mean(x, axis=-1, keepdims=True)
        var = jnp.mean((x - mean) ** 2, axis=-1, keepdims=True)
        x = (x - mean) * lax.rsqrt(var + ln_eps) * gamma + beta
    return x


# ----------------------------------------------------------------------------
# Main
# ----------------------------------------------------------------------------
if __name__ == "__main__":
    B, S, H = 2, 64, 128
    NUM_LAYERS = 4
    CHECKPOINT_STRIDE = 2
    PARAM_DTYPE = jnp.bfloat16

    key = jax.random.PRNGKey(0)
    k_x, *k_layers = jax.random.split(key, 1 + NUM_LAYERS)

    x = jax.random.normal(k_x, (B, S, H), dtype=jnp.float32)

    # Deterministic synthetic parameter init (no checkpoint loading).
    layer_params = []
    for kl in k_layers:
        kw, kb = jax.random.split(kl)
        w = jax.random.normal(kw, (H, H), dtype=jnp.float32) * (1.0 / math.sqrt(H))
        b = jax.random.normal(kb, (1, H), dtype=jnp.float32) * 0.01
        layer_params.append((w, b))

    # Post-norm (post_norm_factory -> LayerNorm(H)).
    gamma = jnp.ones((1, H), dtype=jnp.float32)
    beta = jnp.zeros((1, H), dtype=jnp.float32)
    norm_params = (gamma, beta)

    fwd = jax.jit(
        functools.partial(
            checkpoint_layer_stack_forward,
            enable_checkpoint=True,
            checkpoint_stride=CHECKPOINT_STRIDE,
            param_dtype=PARAM_DTYPE,
        )
    )
    out = jax.block_until_ready(fwd(x, layer_params, norm_params))

    ref = _reference(x, layer_params, norm_params, param_dtype=PARAM_DTYPE)
    assert out.shape == (B, S, H)
    max_err = float(jnp.max(jnp.abs(out - ref)))
    assert jnp.allclose(out, ref, atol=1e-2, rtol=1e-2), max_err

    print("KERNEL_OK")
</pallas_src>

<mosaic_0001>
module attributes {stable_mosaic.version = 11 : i64} {
  func.func @_resident_kernel(%arg0: i32, %arg1: memref<64x128xf32, #tpu.memory_space<vmem>>, %arg2: memref<4x128x128xbf16, #tpu.memory_space<vmem>>, %arg3: memref<4x1x128xbf16, #tpu.memory_space<vmem>>, %arg4: memref<1x128xf32, #tpu.memory_space<vmem>>, %arg5: memref<1x128xf32, #tpu.memory_space<vmem>>, %arg6: memref<64x128xf32, #tpu.memory_space<vmem>>) attributes {dimension_semantics = [#tpu.dimension_semantics<parallel>], iteration_bounds = array<i64: 2>, scalar_prefetch = 0 : i64, scratch_operands = 0 : i64, tpu.core_type = #tpu.core_type<tc>, window_params = [{transform_indices = @transform_0, window_bounds = array<i64: 64, 128>}, {pipeline_mode = #tpu.pipeline_mode<synchronous>, transform_indices = @transform_1, window_bounds = array<i64: 4, 128, 128>}, {pipeline_mode = #tpu.pipeline_mode<synchronous>, transform_indices = @transform_2, window_bounds = array<i64: 4, 1, 128>}, {pipeline_mode = #tpu.pipeline_mode<synchronous>, transform_indices = @transform_3, window_bounds = array<i64: 1, 128>}, {pipeline_mode = #tpu.pipeline_mode<synchronous>, transform_indices = @transform_4, window_bounds = array<i64: 1, 128>}, {transform_indices = @transform_5, window_bounds = array<i64: 64, 128>}]} {
    %c0 = arith.constant 0 : index
    %c0_0 = arith.constant 0 : index
    %0 = vector.load %arg1[%c0, %c0_0] : memref<64x128xf32, #tpu.memory_space<vmem>>, vector<64x128xf32>
    %c0_1 = arith.constant 0 : index
    %c0_2 = arith.constant 0 : index
    %c0_3 = arith.constant 0 : index
    %1 = vector.load %arg2[%c0_1, %c0_2, %c0_3] : memref<4x128x128xbf16, #tpu.memory_space<vmem>>, vector<1x128x128xbf16>
    %2 = vector.shape_cast %1 : vector<1x128x128xbf16> to vector<128x128xbf16>
    %c0_4 = arith.constant 0 : index
    %c0_5 = arith.constant 0 : index
    %c0_6 = arith.constant 0 : index
    %3 = vector.load %arg3[%c0_4, %c0_5, %c0_6] : memref<4x1x128xbf16, #tpu.memory_space<vmem>>, vector<1x1x128xbf16>
    %4 = vector.shape_cast %3 : vector<1x1x128xbf16> to vector<1x128xbf16>
    %5 = arith.extf %4 : vector<1x128xbf16> to vector<1x128xf32>
    %6 = arith.truncf %0 : vector<64x128xf32> to vector<64x128xbf16>
    %cst = arith.constant dense<0.000000e+00> : vector<64x128xf32>
    %7 = tpu.matmul %6, %2, %cst {dimension_numbers = #tpu.dot_dimension_numbers<[1], [0], [0], [1], [0, 0, 1, 1], [], []>} : vector<64x128xbf16>, vector<128x128xbf16>, vector<64x128xf32> -> vector<64x128xf32>
    %8 = vector.broadcast %5 : vector<1x128xf32> to vector<64x128xf32>
    %9 = arith.addf %7, %8 : vector<64x128xf32>
    %10 = arith.mulf %9, %9 : vector<64x128xf32>
    %11 = arith.mulf %9, %10 : vector<64x128xf32>
    %cst_7 = arith.constant 4.471500e-02 : f32
    %12 = vector.broadcast %cst_7 : f32 to vector<64x128xf32>
    %13 = arith.mulf %12, %11 : vector<64x128xf32>
    %14 = arith.addf %9, %13 : vector<64x128xf32>
    %cst_8 = arith.constant 0.797884583 : f32
    %15 = vector.broadcast %cst_8 : f32 to vector<64x128xf32>
    %16 = arith.mulf %15, %14 : vector<64x128xf32>
    %17 = math.tanh %16 : vector<64x128xf32>
    %cst_9 = arith.constant 1.000000e+00 : f32
    %18 = vector.broadcast %cst_9 : f32 to vector<64x128xf32>
    %19 = arith.addf %18, %17 : vector<64x128xf32>
    %cst_10 = arith.constant 5.000000e-01 : f32
    %20 = vector.broadcast %cst_10 : f32 to vector<64x128xf32>
    %21 = arith.mulf %20, %19 : vector<64x128xf32>
    %22 = arith.mulf %9, %21 : vector<64x128xf32>
    %23 = arith.addf %0, %22 : vector<64x128xf32>
    %c1 = arith.constant 1 : index
    %c0_11 = arith.constant 0 : index
    %c0_12 = arith.constant 0 : index
    %24 = vector.load %arg2[%c1, %c0_11, %c0_12] : memref<4x128x128xbf16, #tpu.memory_space<vmem>>, vector<1x128x128xbf16>
    %25 = vector.shape_cast %24 : vector<1x128x128xbf16> to vector<128x128xbf16>
    %c1_13 = arith.constant 1 : index
    %c0_14 = arith.constant 0 : index
    %c0_15 = arith.constant 0 : index
    %26 = vector.load %arg3[%c1_13, %c0_14, %c0_15] : memref<4x1x128xbf16, #tpu.memory_space<vmem>>, vector<1x1x128xbf16>
    %27 = vector.shape_cast %26 : vector<1x1x128xbf16> to vector<1x128xbf16>
    %28 = arith.extf %27 : vector<1x128xbf16> to vector<1x128xf32>
    %29 = arith.truncf %23 : vector<64x128xf32> to vector<64x128xbf16>
    %cst_16 = arith.constant dense<0.000000e+00> : vector<64x128xf32>
    %30 = tpu.matmul %29, %25, %cst_16 {dimension_numbers = #tpu.dot_dimension_numbers<[1], [0], [0], [1], [0, 0, 1, 1], [], []>} : vector<64x128xbf16>, vector<128x128xbf16>, vector<64x128xf32> -> vector<64x128xf32>
    %31 = vector.broadcast %28 : vector<1x128xf32> to vector<64x128xf32>
    %32 = arith.addf %30, %31 : vector<64x128xf32>
    %33 = arith.mulf %32, %32 : vector<64x128xf32>
    %34 = arith.mulf %32, %33 : vector<64x128xf32>
    %cst_17 = arith.constant 4.471500e-02 : f32
    %35 = vector.broadcast %cst_17 : f32 to vector<64x128xf32>
    %36 = arith.mulf %35, %34 : vector<64x128xf32>
    %37 = arith.addf %32, %36 : vector<64x128xf32>
    %cst_18 = arith.constant 0.797884583 : f32
    %38 = vector.broadcast %cst_18 : f32 to vector<64x128xf32>
    %39 = arith.mulf %38, %37 : vector<64x128xf32>
    %40 = math.tanh %39 : vector<64x128xf32>
    %cst_19 = arith.constant 1.000000e+00 : f32
    %41 = vector.broadcast %cst_19 : f32 to vector<64x128xf32>
    %42 = arith.addf %41, %40 : vector<64x128xf32>
    %cst_20 = arith.constant 5.000000e-01 : f32
    %43 = vector.broadcast %cst_20 : f32 to vector<64x128xf32>
    %44 = arith.mulf %43, %42 : vector<64x128xf32>
    %45 = arith.mulf %32, %44 : vector<64x128xf32>
    %46 = arith.addf %23, %45 : vector<64x128xf32>
    %c2 = arith.constant 2 : index
    %c0_21 = arith.constant 0 : index
    %c0_22 = arith.constant 0 : index
    %47 = vector.load %arg2[%c2, %c0_21, %c0_22] : memref<4x128x128xbf16, #tpu.memory_space<vmem>>, vector<1x128x128xbf16>
    %48 = vector.shape_cast %47 : vector<1x128x128xbf16> to vector<128x128xbf16>
    %c2_23 = arith.constant 2 : index
    %c0_24 = arith.constant 0 : index
    %c0_25 = arith.constant 0 : index
    %49 = vector.load %arg3[%c2_23, %c0_24, %c0_25] : memref<4x1x128xbf16, #tpu.memory_space<vmem>>, vector<1x1x128xbf16>
    %50 = vector.shape_cast %49 : vector<1x1x128xbf16> to vector<1x128xbf16>
    %51 = arith.extf %50 : vector<1x128xbf16> to vector<1x128xf32>
    %52 = arith.truncf %46 : vector<64x128xf32> to vector<64x128xbf16>
    %cst_26 = arith.constant dense<0.000000e+00> : vector<64x128xf32>
    %53 = tpu.matmul %52, %48, %cst_26 {dimension_numbers = #tpu.dot_dimension_numbers<[1], [0], [0], [1], [0, 0, 1, 1], [], []>} : vector<64x128xbf16>, vector<128x128xbf16>, vector<64x128xf32> -> vector<64x128xf32>
    %54 = vector.broadcast %51 : vector<1x128xf32> to vector<64x128xf32>
    %55 = arith.addf %53, %54 : vector<64x128xf32>
    %56 = arith.mulf %55, %55 : vector<64x128xf32>
    %57 = arith.mulf %55, %56 : vector<64x128xf32>
    %cst_27 = arith.constant 4.471500e-02 : f32
    %58 = vector.broadcast %cst_27 : f32 to vector<64x128xf32>
    %59 = arith.mulf %58, %57 : vector<64x128xf32>
    %60 = arith.addf %55, %59 : vector<64x128xf32>
    %cst_28 = arith.constant 0.797884583 : f32
    %61 = vector.broadcast %cst_28 : f32 to vector<64x128xf32>
    %62 = arith.mulf %61, %60 : vector<64x128xf32>
    %63 = math.tanh %62 : vector<64x128xf32>
    %cst_29 = arith.constant 1.000000e+00 : f32
    %64 = vector.broadcast %cst_29 : f32 to vector<64x128xf32>
    %65 = arith.addf %64, %63 : vector<64x128xf32>
    %cst_30 = arith.constant 5.000000e-01 : f32
    %66 = vector.broadcast %cst_30 : f32 to vector<64x128xf32>
    %67 = arith.mulf %66, %65 : vector<64x128xf32>
    %68 = arith.mulf %55, %67 : vector<64x128xf32>
    %69 = arith.addf %46, %68 : vector<64x128xf32>
    %c3 = arith.constant 3 : index
    %c0_31 = arith.constant 0 : index
    %c0_32 = arith.constant 0 : index
    %70 = vector.load %arg2[%c3, %c0_31, %c0_32] : memref<4x128x128xbf16, #tpu.memory_space<vmem>>, vector<1x128x128xbf16>
    %71 = vector.shape_cast %70 : vector<1x128x128xbf16> to vector<128x128xbf16>
    %c3_33 = arith.constant 3 : index
    %c0_34 = arith.constant 0 : index
    %c0_35 = arith.constant 0 : index
    %72 = vector.load %arg3[%c3_33, %c0_34, %c0_35] : memref<4x1x128xbf16, #tpu.memory_space<vmem>>, vector<1x1x128xbf16>
    %73 = vector.shape_cast %72 : vector<1x1x128xbf16> to vector<1x128xbf16>
    %74 = arith.extf %73 : vector<1x128xbf16> to vector<1x128xf32>
    %75 = arith.truncf %69 : vector<64x128xf32> to vector<64x128xbf16>
    %cst_36 = arith.constant dense<0.000000e+00> : vector<64x128xf32>
    %76 = tpu.matmul %75, %71, %cst_36 {dimension_numbers = #tpu.dot_dimension_numbers<[1], [0], [0], [1], [0, 0, 1, 1], [], []>} : vector<64x128xbf16>, vector<128x128xbf16>, vector<64x128xf32> -> vector<64x128xf32>
    %77 = vector.broadcast %74 : vector<1x128xf32> to vector<64x128xf32>
    %78 = arith.addf %76, %77 : vector<64x128xf32>
    %79 = arith.mulf %78, %78 : vector<64x128xf32>
    %80 = arith.mulf %78, %79 : vector<64x128xf32>
    %cst_37 = arith.constant 4.471500e-02 : f32
    %81 = vector.broadcast %cst_37 : f32 to vector<64x128xf32>
    %82 = arith.mulf %81, %80 : vector<64x128xf32>
    %83 = arith.addf %78, %82 : vector<64x128xf32>
    %cst_38 = arith.constant 0.797884583 : f32
    %84 = vector.broadcast %cst_38 : f32 to vector<64x128xf32>
    %85 = arith.mulf %84, %83 : vector<64x128xf32>
    %86 = math.tanh %85 : vector<64x128xf32>
    %cst_39 = arith.constant 1.000000e+00 : f32
    %87 = vector.broadcast %cst_39 : f32 to vector<64x128xf32>
    %88 = arith.addf %87, %86 : vector<64x128xf32>
    %cst_40 = arith.constant 5.000000e-01 : f32
    %89 = vector.broadcast %cst_40 : f32 to vector<64x128xf32>
    %90 = arith.mulf %89, %88 : vector<64x128xf32>
    %91 = arith.mulf %78, %90 : vector<64x128xf32>
    %92 = arith.addf %69, %91 : vector<64x128xf32>
    %c0_41 = arith.constant 0 : index
    %c0_42 = arith.constant 0 : index
    %93 = vector.load %arg4[%c0_41, %c0_42] : memref<1x128xf32, #tpu.memory_space<vmem>>, vector<1x128xf32>
    %c0_43 = arith.constant 0 : index
    %c0_44 = arith.constant 0 : index
    %94 = vector.load %arg5[%c0_43, %c0_44] : memref<1x128xf32, #tpu.memory_space<vmem>>, vector<1x128xf32>
    %cst_45 = arith.constant dense<0.000000e+00> : vector<64xf32>
    %95 = vector.multi_reduction <add>, %92, %cst_45 [1] : vector<64x128xf32> to vector<64xf32>
    %96 = vector.shape_cast %95 : vector<64xf32> to vector<64x1xf32>
    %cst_46 = arith.constant 1.280000e+02 : f32
    %97 = vector.broadcast %cst_46 : f32 to vector<64x1xf32>
    %98 = arith.divf %96, %97 : vector<64x1xf32>
    %99 = vector.broadcast %98 : vector<64x1xf32> to vector<64x128xf32>
    %100 = arith.subf %92, %99 : vector<64x128xf32>
    %101 = arith.mulf %100, %100 : vector<64x128xf32>
    %cst_47 = arith.constant dense<0.000000e+00> : vector<64xf32>
    %102 = vector.multi_reduction <add>, %101, %cst_47 [1] : vector<64x128xf32> to vector<64xf32>
    %103 = vector.shape_cast %102 : vector<64xf32> to vector<64x1xf32>
    %cst_48 = arith.constant 1.280000e+02 : f32
    %104 = vector.broadcast %cst_48 : f32 to vector<64x1xf32>
    %105 = arith.divf %103, %104 : vector<64x1xf32>
    %cst_49 = arith.constant 9.99999974E-6 : f32
    %106 = vector.broadcast %cst_49 : f32 to vector<64x1xf32>
    %107 = arith.addf %105, %106 : vector<64x1xf32>
    %108 = math.rsqrt %107 : vector<64x1xf32>
    %109 = vector.broadcast %108 : vector<64x1xf32> to vector<64x128xf32>
    %110 = arith.mulf %100, %109 : vector<64x128xf32>
    %111 = vector.broadcast %93 : vector<1x128xf32> to vector<64x128xf32>
    %112 = arith.mulf %110, %111 : vector<64x128xf32>
    %113 = vector.broadcast %94 : vector<1x128xf32> to vector<64x128xf32>
    %114 = arith.addf %112, %113 : vector<64x128xf32>
    %c0_50 = arith.constant 0 : index
    %c0_51 = arith.constant 0 : index
    %115 = vector.load %arg6[%c0_50, %c0_51] : memref<64x128xf32, #tpu.memory_space<vmem>>, vector<64x128xf32>
    tpu.vector_store %arg6[%c0_50, %c0_51], %114 {strides = array<i32>} : memref<64x128xf32, #tpu.memory_space<vmem>>, vector<64x128xf32>,
    return
  }
  func.func @transform_0(%arg0: i32) -> (i32, i32) {
    %c0_i32 = arith.constant 0 : i32
    %c0_i32_0 = arith.constant 0 : i32
    return %arg0, %c0_i32 : i32, i32
  }
  func.func @transform_1(%arg0: i32) -> (i32, i32, i32) {
    %c0_i32 = arith.constant 0 : i32
    %c0_i32_0 = arith.constant 0 : i32
    %c0_i32_1 = arith.constant 0 : i32
    %c0_i32_2 = arith.constant 0 : i32
    return %c0_i32, %c0_i32_0, %c0_i32_1 : i32, i32, i32
  }
  func.func @transform_2(%arg0: i32) -> (i32, i32, i32) {
    %c0_i32 = arith.constant 0 : i32
    %c0_i32_0 = arith.constant 0 : i32
    %c0_i32_1 = arith.constant 0 : i32
    %c0_i32_2 = arith.constant 0 : i32
    return %c0_i32, %c0_i32_0, %c0_i32_1 : i32, i32, i32
  }
  func.func @transform_3(%arg0: i32) -> (i32, i32) {
    %c0_i32 = arith.constant 0 : i32
    %c0_i32_0 = arith.constant 0 : i32
    %c0_i32_1 = arith.constant 0 : i32
    return %c0_i32, %c0_i32_0 : i32, i32
  }
  func.func @transform_4(%arg0: i32) -> (i32, i32) {
    %c0_i32 = arith.constant 0 : i32
    %c0_i32_0 = arith.constant 0 : i32
    %c0_i32_1 = arith.constant 0 : i32
    return %c0_i32, %c0_i32_0 : i32, i32
  }
  func.func @transform_5(%arg0: i32) -> (i32, i32) {
    %c0_i32 = arith.constant 0 : i32
    %c0_i32_0 = arith.constant 0 : i32
    return %arg0, %c0_i32 : i32, i32
  }
}

</mosaic_0001>

<bundles_post_ra>
// kernel: checkpoint_layer_stack_forward.1
= control target key start
LH: loop header
LB: loop body
LE: loop exit
PB: predicated region body
PF: predicated region fallthrough
CT: control target
= control target key end

     0   :  { %10 = vsyncpa [#allocation3], 0  ;;  %s2451_s0 = inlined_call_operand.vmem [shape: f32[128,128], index: 0, kind: input, shape index: {}]   ;;  %s2452_s1 = inlined_call_operand.vmem [shape: bf16[4,128,128], index: 1, kind: input, shape index: {}]   ;;  %s2453_s2 = inlined_call_operand.vmem [shape: bf16[4,1,128], index: 2, kind: input, shape index: {}]   ;;  %s2454_s3 = inlined_call_operand.vmem [shape: f32[1,128], index: 3, kind: input, shape index: {}]   ;;  %s2455_s4 = inlined_call_operand.vmem [shape: f32[1,128], index: 4, kind: input, shape index: {}]   ;;  %s2456_s5 = inlined_call_operand.hbm [shape: f32[128,128], index: 5, kind: output, shape index: {}]  }
   0x1   :  { %12 = vsyncpa [#allocation3 + $0x1], 0  ;;  %s1812_s18 = smov 0   ;;  %s1814_s19 = smov 0  }
   0x2   :  { %s1816_s20 = smov 0   ;;  %s1818_s21 = smov 0  }
   0x3 LB: > { %s1833_s22 = sadd.s32 4294967295, %s1777_s21   ;;  %s1320_s23 = sadd.s32 4294967294, %s1777_s21   ;;  %s1777_s21 = sphi %s1818_s21, %s2462_s21   ;;  %s1773_s20 = sphi %s1816_s20, %s2461_s20   ;;  %s1769_s19 = sphi %s1814_s19, %s2460_s19   ;;  %s1765_s18 = sphi %s1812_s18, %s2459_s18  }
   0x4   : > { %s1837_s24 = sadd.s32 1, %s1777_s21   ;;  %s135_s25 = sadd.s32 1, %s1773_s20 }
   0x5   : > { %s132_s26 = ssub.s32 %s1777_s21, %s1837_s24  ;;  %p145_p0 = scmp.ne.s32.totalorder %s1773_s20, %s1769_s19 }
   0x6   : > { %p133_p1 = scmp.eq.s32.totalorder %s132_s26, 0  ;;  %p146_p2 = scmp.eq.s32.totalorder %s1833_s22, 1 }
   0x7   : > { %p151_p3 = scmp.ne.s32.totalorder %s1769_s19, %s1765_s18  ;;  %p152_p4 = scmp.eq.s32.totalorder %s1320_s23, 1 }
   0x8   : > { %s1848_s27 = scalar_select %p133_p1, %s1773_s20, %s135_s25  }
   0x9   : > { %p1850_p5 = por %p146_p2, %p145_p0  ;;  %p1854_p6 = por %p152_p4, %p151_p3 }
   0xa   : > { %p1323_p7 = scmp.ge.s32.totalorder %s1777_s21, 1  ;;  %p191_p8 = scmp.lt.s32.totalorder %s1777_s21, 3 }
   0xc   : > { %p192_p9 = pnand %p1323_p7, %p191_p8 }
   0xd   : > { %v1603_v0 = vld [vmem:[%s2452_s1] sm:$0xff] (!%p192_p9)   ;;  %s1325_s7 = sshll.u32 (!%p192_p9), %s1833_s22, 3  ;;  %v1604_v1 = vld [vmem:[%s2452_s1 + $0x8] sm:$0xff] (!%p192_p9)   ;;  %v1605_v2 = vld [vmem:[%s2452_s1 + $0x10] sm:$0xff] (!%p192_p9)   ;;  %v257_v28 = vlaneseq (!%p192_p9)  ;;  %s216_s23 = sand.u32 (!%p192_p9), 1, %s1769_s19  }
   0xe   : > { %195 = sbr.rel (%p192_p9) target bundleno = 1378 (0x562), region = 40  ;;  %p220_p10 = scmp.lt.s32.totalorder (!%p192_p9), %s1325_s7, 15  ;;  %1466 = vmatprep.subr.bf16.mxu0 (!%p192_p9), %v1603_v0  ;;  %v1606_v3 = vld [vmem:[%s2452_s1 + $0x18] sm:$0xff] (!%p192_p9)   ;;  %v1607_v7 = vld [vmem:[%s2452_s1 + $0x20] sm:$0xff] (!%p192_p9)   ;;  %v1608_v8 = vld [vmem:[%s2452_s1 + $0x28] sm:$0xff] (!%p192_p9)  }
   0xf   : > { %1467 = vmatpush3.bf16.msra.mxu0 (!%p192_p9), %v1603_v0  ;;  %v1609_v9 = vld [vmem:[%s2452_s1 + $0x30] sm:$0xff] (!%p192_p9)   ;;  %v1610_v10 = vld [vmem:[%s2452_s1 + $0x38] sm:$0xff] (!%p192_p9)   ;;  %v1611_v20 = vld [vmem:[%s2452_s1 + $0x40] sm:$0xff] (!%p192_p9)   ;;  %v258_v29 = vshrl.u32 (!%p192_p9), %v257_v28, 7  ;;  %s1324_s30 = sshll.u32 (!%p192_p9), %s216_s23, 6  ;;  %s1417_s9 = sshll.u32 (!%p192_p9), %s1833_s22, 10 }
  0x10   : > { %1468 = vmatprep.subr.bf16.mxu0 (!%p192_p9), %v1604_v1  ;;  %1490 = vmatprep.subr.bf16.mxu1 (!%p192_p9), %v1611_v20  ;;  %v1612_v21 = vld [vmem:[%s2452_s1 + $0x48] sm:$0xff] (!%p192_p9)   ;;  %v1613_v22 = vld [vmem:[%s2452_s1 + $0x50] sm:$0xff] (!%p192_p9)   ;;  %v1614_v23 = vld [vmem:[%s2452_s1 + $0x58] sm:$0xff] (!%p192_p9)   ;;  %s2384_s8 = scalar_lea.vmem (!%p192_p9), [#allocation2], %s1324_s30  ;;  %s2403_s13 = scalar_lea.hbm (!%p192_p9), %s2456_s5, %s1417_s9 }
  0x11   : > { %1491 = vmatpush3.bf16.msra.mxu1 (!%p192_p9), %v1611_v20  ;;  %v1615_v24 = vld [vmem:[%s2452_s1 + $0x60] sm:$0xff] (!%p192_p9)   ;;  %v1616_v25 = vld [vmem:[%s2452_s1 + $0x68] sm:$0xff] (!%p192_p9)   ;;  %v1617_v26 = vld [vmem:[%s2452_s1 + $0x70] sm:$0xff] (!%p192_p9)   ;;  %v1949_v32 = vsub.s32 (!%p192_p9), 0, %v258_v29  ;;  %s1258_s10 = sshll.u32 (!%p192_p9), %s2384_s8, 4  ;;  %s2410_s14 = scalar_lea.sflag (!%p192_p9), [#allocation3], %s216_s23  ;;  %s2405_s10 = int_to_ptr.vmem [resolvable:$true] %s1258_s10 }
  0x12   : > { %1492 = vmatprep.subr.bf16.mxu1 (!%p192_p9), %v1612_v21  ;;  %v1618_v27 = vld [vmem:[%s2452_s1 + $0x78] sm:$0xff] (!%p192_p9)   ;;  %v251_v30 = vld [vmem:[%s2453_s2] sm:$0x1] (!%p192_p9)  ;;  %s1715_s22 = scalar_lea.vmem (!%p192_p9), %s2405_s10, 1024  ;;  %s1779_s16 = smov (!%p192_p9), [#allocation2]  }
  0x13   : > { %1469 = vmatpush3.bf16.msra.mxu0 (!%p192_p9), %v1604_v1  ;;  %v252_v31 = vunpack.c.l.bf16 (!%p192_p9), %v251_v30  ;;  %p1716_p11 = scmp.ne.s32.totalorder (!%p192_p9), %s2405_s10, %s1715_s22 }
  0x14   : > { %1470 = vmatprep.subr.bf16.mxu0 (!%p192_p9), %v1605_v2 }
  0x15   : > { %s2464_s7 = smov (!%p220_p10, %s1325_s7), 15  ;;  %1493 = vmatpush3.bf16.msra.mxu1 %v1612_v21  ;;  %v260_v33 = vrot.slane %v252_v31, %v1949_v32  ;;  %p1717_p12 = pnand %p1716_p11, %p1850_p5 }
  0x16   : > { %s1326_s12 = sshll.u32 %s2464_s7, 3  ;;  %1494 = vmatprep.subr.bf16.mxu1 %v1613_v22 }
  0x17   : > { %s1873_s15 = scalar_lea.vmem %s2451_s0, %s1326_s12  ;;  %1471 = vmatpush3.bf16.msra.mxu0 %v1605_v2  ;;  %p1718_p13 = pneg %p1717_p12 }
  0x18   : > { %v1879_v4 = vld [vmem:[%s1873_s15] sm:$0xff]  ;;  %v1882_v5 = vld [vmem:[%s1873_s15 + $0x8] sm:$0xff]  ;;  %1472 = vmatprep.subr.bf16.mxu0 %v1606_v3  ;;  %v1899_v11 = vld [vmem:[%s1873_s15 + $0x10] sm:$0xff] }
  0x19   : > { %v253_v6 = vpack.c.bf16 %v1882_v5, %v1879_v4  ;;  %v1902_v12 = vld [vmem:[%s1873_s15 + $0x18] sm:$0xff]  ;;  %v1905_v13 = vld [vmem:[%s1873_s15 + $0x20] sm:$0xff]  ;;  %v1908_v14 = vld [vmem:[%s1873_s15 + $0x28] sm:$0xff]  ;;  %1495 = vmatpush3.bf16.msra.mxu1 %v1613_v22 }
  0x1a   : > { %v254_v15 = vpack.c.bf16 %v1902_v12, %v1899_v11  ;;  %v255_v16 = vpack.c.bf16 %v1908_v14, %v1905_v13  ;;  %v1915_v17 = vld [vmem:[%s1873_s15 + $0x30] sm:$0xff]  ;;  %v1918_v18 = vld [vmem:[%s1873_s15 + $0x38] sm:$0xff]  ;;  %1496 = vmatprep.subr.bf16.mxu1 %v1614_v23  ;;  %s1719_s15 = sshll.u32 %s1779_s16, 4  ;;  %s1720_s15 = int_to_ptr.vmem [resolvable:$false] %s1719_s15 }
  0x1b   : > { %1482 = vmatprep.mubr.bf16.mxu0 %v253_v6  ;;  %1473 = vmatpush3.bf16.msra.mxu0 %v1606_v3  ;;  %v256_v19 = vpack.c.bf16 %v1918_v18, %v1915_v17  ;;  %s1721_s17 = scalar_lea.vmem %s1720_s15, 2048  ;;  %p1722_p0 = scmp.lt.s32.totalorder %s2405_s10, %s1720_s15 }
  0x1c   : > { %1474 = vmatprep.subr.bf16.mxu0 %v1607_v7  ;;  %p1723_p1 = scmp.lt.s32.totalorder %s1721_s17, %s1715_s22 }
  0x1d   : > { %1497 = vmatpush3.bf16.msra.mxu1 %v1614_v23 }
  0x1e   : > { %1498 = vmatprep.subr.bf16.mxu1 %v1615_v24  ;;  %p1724_p2 = por %p1723_p1, %p1722_p0 }
  0x1f   : > { %1475 = vmatpush3.bf16.msra.mxu0 %v1607_v7 }
  0x20   : > { %1476 = vmatprep.subr.bf16.mxu0 %v1608_v8  ;;  %p1725_p3 = pnand %p1724_p2, %p1718_p13 }
  0x21   : > { %1499 = vmatpush3.bf16.msra.mxu1 %v1615_v24 }
  0x22   : > { %1500 = vmatprep.subr.bf16.mxu1 %v1616_v25 }
  0x23   : > { %1477 = vmatpush3.bf16.msra.mxu0 %v1608_v8 }
  0x24   : > { %1478 = vmatprep.subr.bf16.mxu0 %v1609_v9 }
  0x25   : > { %1501 = vmatpush3.bf16.msra.mxu1 %v1616_v25 }
  0x26   : > { %1502 = vmatprep.subr.bf16.mxu1 %v1617_v26 }
  0x27   : > { %1479 = vmatpush3.bf16.msra.mxu0 %v1609_v9 }
  0x28   : > { %1480 = vmatprep.subr.bf16.mxu0 %v1610_v10 }
  0x29   : > { %1503 = vmatpush3.bf16.msra.mxu1 %v1617_v26 }
  0x2a   : > { %1504 = vmatprep.subr.bf16.mxu1 %v1618_v27 }
  0x2b   : > { %1481 = vmatpush3.bf16.msra.mxu0 %v1610_v10 }
  0x2d   : > { %1505 = vmatpush3.bf16.msra.mxu1 %v1618_v27 }
  0x2e   : > { %1483 = vmatmul.mubr.bf16.vlgmr.msra.gmra.mrb[0].mxu0 %v254_v15 }
  0x2f   : > { %1486 = vmatprep.mubr.bf16.mxu0 %v255_v16 }
  0x36   : > { %1487 = vmatmul.mubr.bf16.gmra.mrb[4].mxu0 %v256_v19 }
 0x101   : > { %v1484_v34 = vpop.f32.mrb[0].mxu0 }
 0x102   : > { %v1952_v35 = vadd.f32 %v1484_v34, %v260_v33  ;;  %v343_v36 = vpop.f32.mrb[1].mxu0 }
 0x103   : > { %v1954_v37 = vadd.f32 %v343_v36, %v260_v33  ;;  %v1485_v38 = vpop.f32.mrb[2].mxu0 }
 0x104   : > { %v376_v39 = vmul.f32 %v1952_v35, %v1952_v35  ;;  %v1958_v40 = vadd.f32 %v1485_v38, %v260_v33  ;;  %v346_v41 = vpop.f32.mrb[3].mxu0 }
 0x105   : > { %v374_v42 = vmul.f32 %v1954_v37, %v1954_v37  ;;  %v1962_v43 = vadd.f32 %v346_v41, %v260_v33 }
 0x106   : > { %v384_v44 = vmul.f32 %v376_v39, %v1952_v35  ;;  %v377_v45 = vmul.f32 %v1958_v40, %v1958_v40 }
 0x107   : > { %v382_v46 = vmul.f32 %v374_v42, %v1954_v37  ;;  %v375_v47 = vmul.f32 %v1962_v43, %v1962_v43 }
 0x108   : > { %v392_v48 = vmul.f32 0.044715, %v384_v44  ;;  %v385_v49 = vmul.f32 %v377_v45, %v1958_v40 }
 0x109   : > { %v390_v50 = vmul.f32 0.044715, %v382_v46  ;;  %v383_v51 = vmul.f32 %v375_v47, %v1962_v43  ;;  %v1488_v52 = vpop.f32.mrb[4].mxu0 }
 0x10a   : > { %v400_v53 = vadd.f32 %v392_v48, %v1952_v35  ;;  %v393_v54 = vmul.f32 0.044715, %v385_v49  ;;  %v1973_v55 = vadd.f32 %v1488_v52, %v260_v33  ;;  %v359_v56 = vpop.f32.mrb[5].mxu0 }
 0x10b   : > { %v398_v57 = vadd.f32 %v390_v50, %v1954_v37  ;;  %v391_v58 = vmul.f32 0.044715, %v383_v51  ;;  %v1976_v59 = vadd.f32 %v359_v56, %v260_v33  ;;  %v1489_v60 = vpop.f32.mrb[6].mxu0 }
 0x10c   : > { %v408_v61 = vmul.f32 0.7978846, %v400_v53  ;;  %v401_v62 = vadd.f32 %v393_v54, %v1958_v40  ;;  %v380_v63 = vmul.f32 %v1973_v55, %v1973_v55  ;;  %v1981_v0 = vadd.f32 %v1489_v60, %v260_v33  ;;  %v362_v1 = vpop.f32.mrb[7].mxu0 }
 0x10d   : > { %v406_v2 = vmul.f32 0.7978846, %v398_v57  ;;  %v399_v3 = vadd.f32 %v391_v58, %v1962_v43  ;;  %v378_v6 = vmul.f32 %v1976_v59, %v1976_v59  ;;  %v1986_v7 = vadd.f32 %v362_v1, %v260_v33 }
 0x10e   : > { %1635 = vtanh.f32 %v408_v61  ;;  %v409_v8 = vmul.f32 0.7978846, %v401_v62  ;;  %v388_v9 = vmul.f32 %v380_v63, %v1973_v55  ;;  %v381_v10 = vmul.f32 %v1981_v0, %v1981_v0 }
 0x10f   : > { %v407_v15 = vmul.f32 0.7978846, %v399_v3  ;;  %v386_v16 = vmul.f32 %v378_v6, %v1976_v59  ;;  %v379_v19 = vmul.f32 %v1986_v7, %v1986_v7  ;;  %1637 = vtanh.f32 %v406_v2 }
 0x110   : > { %1639 = vtanh.f32 %v409_v8  ;;  %v396_v20 = vmul.f32 0.044715, %v388_v9  ;;  %v389_v21 = vmul.f32 %v381_v10, %v1981_v0 }
 0x111   : > { %v394_v22 = vmul.f32 0.044715, %v386_v16  ;;  %v387_v23 = vmul.f32 %v379_v19, %v1986_v7  ;;  %1641 = vtanh.f32 %v407_v15 }
 0x112   : > { %v404_v24 = vadd.f32 %v396_v20, %v1973_v55  ;;  %v397_v25 = vmul.f32 0.044715, %v389_v21  ;;  %v1625_v21 = vld [vmem:[%s2452_s1 + $0xb0] sm:$0xff]  }
 0x113   : > { %v402_v26 = vadd.f32 %v394_v22, %v1976_v59  ;;  %v395_v27 = vmul.f32 0.044715, %v387_v23  ;;  %v1626_v22 = vld [vmem:[%s2452_s1 + $0xb8] sm:$0xff]   ;;  %v1351_v23 = vld [vmem:[%s2453_s2 + $0x1] sm:$0x1] }
 0x114   : > { %v412_v28 = vmul.f32 0.7978846, %v404_v24  ;;  %v405_v29 = vadd.f32 %v397_v25, %v1981_v0  ;;  %v473_v24 = vunpack.c.l.bf16 %v1351_v23 }
 0x115   : > { %v410_v30 = vmul.f32 0.7978846, %v402_v26  ;;  %v403_v31 = vadd.f32 %v395_v27, %v1986_v7 }
 0x116   : > { %1643 = vtanh.f32 %v412_v28  ;;  %v413_v33 = vmul.f32 0.7978846, %v405_v29  ;;  %v481_v25 = vrot.slane %v473_v24, %v1949_v32 }
 0x117   : > { %1645 = vtanh.f32 %v410_v30  ;;  %v411_v34 = vmul.f32 0.7978846, %v403_v31 }
 0x118   : > { %v1636_v36 = vpop.eup %1635  ;;  %1647 = vtanh.f32 %v413_v33 }
 0x119   : > { %v1638_v38 = vpop.eup %1637  ;;  %1649 = vtanh.f32 %v411_v34  ;;  %v424_v39 = vadd.f32 1.0, %v1636_v36 }
 0x11a   : > { %v1640_v41 = vpop.eup %1639  ;;  %v422_v42 = vadd.f32 1.0, %v1638_v38 }
 0x11b   : > { %v1642_v44 = vpop.eup %1641  ;;  %v425_v45 = vadd.f32 1.0, %v1640_v41  ;;  %v432_v46 = vmul.f32 0.5, %v424_v39 }
 0x11c   : > { %v423_v47 = vadd.f32 1.0, %v1642_v44  ;;  %v430_v48 = vmul.f32 0.5, %v422_v42 }
 0x11d   : > { %v433_v49 = vmul.f32 0.5, %v425_v45  ;;  %v440_v52 = vmul.f32 %v432_v46, %v1952_v35 }
 0x11e   : > { %v431_v50 = vmul.f32 0.5, %v423_v47  ;;  %v438_v51 = vmul.f32 %v430_v48, %v1954_v37 }
 0x11f   : > { %v441_v53 = vmul.f32 %v433_v49, %v1958_v40  ;;  %v2014_v35 = vadd.f32 %v440_v52, %v1899_v11 }
 0x120   : > { %v1644_v54 = vpop.eup %1643  ;;  %v439_v56 = vmul.f32 %v431_v50, %v1962_v43  ;;  %v2008_v62 = vadd.f32 %v438_v51, %v1879_v4 }
 0x121   : > { %v1646_v57 = vpop.eup %1645  ;;  %v2005_v58 = vadd.f32 %v441_v53, %v1902_v12  ;;  %v428_v60 = vadd.f32 1.0, %v1644_v54 }
 0x122   : > { %v1648_v61 = vpop.eup %1647  ;;  %v2011_v63 = vadd.f32 %v439_v56, %v1882_v5  ;;  %v426_v37 = vadd.f32 1.0, %v1646_v57 }
 0x123   : > { %v1650_v1 = vpop.eup %1649  ;;  %v429_v40 = vadd.f32 1.0, %v1648_v61  ;;  %v436_v2 = vmul.f32 0.5, %v428_v60  ;;  %v475_v6 = vpack.c.bf16 %v2005_v58, %v2014_v35 }
 0x124   : > { %v474_v43 = vpack.c.bf16 %v2011_v63, %v2008_v62  ;;  %v427_v12 = vadd.f32 1.0, %v1650_v1  ;;  %v434_v3 = vmul.f32 0.5, %v426_v37 }
 0x125   : > { %v437_v4 = vmul.f32 0.5, %v429_v40  ;;  %v444_v9 = vmul.f32 %v436_v2, %v1973_v55 }
 0x126   : > { %1506 = vmatprep.mubr.bf16.mxu1 %v474_v43  ;;  %v435_v8 = vmul.f32 0.5, %v427_v12  ;;  %v442_v5 = vmul.f32 %v434_v3, %v1976_v59 }
 0x127   : > { %1507 = vmatmul.mubr.bf16.vlgmr.msra.gmra.mrb[0].mxu1 %v475_v6  ;;  %v445_v11 = vmul.f32 %v437_v4, %v1981_v0  ;;  %v2034_v20 = vadd.f32 %v444_v9, %v1915_v17  ;;  %v1622_v17 = vld [vmem:[%s2452_s1 + $0x98] sm:$0xff]   ;;  %v1623_v0 = vld [vmem:[%s2452_s1 + $0xa0] sm:$0xff]  }
 0x128   : > { %v443_v10 = vmul.f32 %v435_v8, %v1986_v7  ;;  %v2028_v16 = vadd.f32 %v442_v5, %v1905_v13  ;;  %v1620_v13 = vld [vmem:[%s2452_s1 + $0x88] sm:$0xff]  }
 0x129   : > { %v2025_v15 = vadd.f32 %v445_v11, %v1918_v18  ;;  %v1619_v18 = vld [vmem:[%s2452_s1 + $0x80] sm:$0xff]   ;;  %v1624_v7 = vld [vmem:[%s2452_s1 + $0xa8] sm:$0xff]  }
 0x12a   : > { %v2031_v19 = vadd.f32 %v443_v10, %v1908_v14  ;;  %1514 = vmatprep.subr.bf16.mxu0 %v1619_v18  ;;  %v1621_v14 = vld [vmem:[%s2452_s1 + $0x90] sm:$0xff]  }
 0x12b   : > { %v477_v55 = vpack.c.bf16 %v2025_v15, %v2034_v20  ;;  %1515 = vmatpush3.bf16.msra.mxu0 %v1619_v18 }
 0x12c   : > { %v476_v59 = vpack.c.bf16 %v2031_v19, %v2028_v16  ;;  %1516 = vmatprep.subr.bf16.mxu0 %v1620_v13 }
 0x12e   : > { %1510 = vmatprep.mubr.bf16.mxu1 %v476_v59 }
 0x12f   : > { %1511 = vmatmul.mubr.bf16.gmra.mrb[4].mxu1 %v477_v55  ;;  %1517 = vmatpush3.bf16.msra.mxu0 %v1620_v13 }
 0x130   : > { %1518 = vmatprep.subr.bf16.mxu0 %v1621_v14 }
 0x133   : > { %1519 = vmatpush3.bf16.msra.mxu0 %v1621_v14 }
 0x134   : > { %1520 = vmatprep.subr.bf16.mxu0 %v1622_v17 }
 0x137   : > { %1521 = vmatpush3.bf16.msra.mxu0 %v1622_v17 }
 0x138   : > { %1522 = vmatprep.subr.bf16.mxu0 %v1623_v0 }
 0x13b   : > { %1523 = vmatpush3.bf16.msra.mxu0 %v1623_v0 }
 0x13c   : > { %1524 = vmatprep.subr.bf16.mxu0 %v1624_v7 }
 0x13f   : > { %1525 = vmatpush3.bf16.msra.mxu0 %v1624_v7 }
 0x140   : > { %1526 = vmatprep.subr.bf16.mxu0 %v1625_v21 }
 0x143   : > { %1527 = vmatpush3.bf16.msra.mxu0 %v1625_v21 }
 0x144   : > { %1528 = vmatprep.subr.bf16.mxu0 %v1626_v22 }
 0x147   : > { %1529 = vmatpush3.bf16.msra.mxu0 %v1626_v22 }
 0x1fa   : > { %v1508_v26 = vpop.f32.mrb[0].mxu1 }
 0x1fb   : > { %v2068_v27 = vadd.f32 %v1508_v26, %v481_v25  ;;  %v564_v28 = vpop.f32.mrb[1].mxu1 }
 0x1fc   : > { %v2070_v29 = vadd.f32 %v564_v28, %v481_v25  ;;  %v1509_v30 = vpop.f32.mrb[2].mxu1 }
 0x1fd   : > { %v597_v31 = vmul.f32 %v2068_v27, %v2068_v27  ;;  %v2074_v33 = vadd.f32 %v1509_v30, %v481_v25  ;;  %v567_v34 = vpop.f32.mrb[3].mxu1 }
 0x1fe   : > { %v595_v36 = vmul.f32 %v2070_v29, %v2070_v29  ;;  %v2078_v38 = vadd.f32 %v567_v34, %v481_v25 }
 0x1ff   : > { %v605_v39 = vmul.f32 %v597_v31, %v2068_v27  ;;  %v598_v41 = vmul.f32 %v2074_v33, %v2074_v33 }
 0x200   : > { %v603_v42 = vmul.f32 %v595_v36, %v2070_v29  ;;  %v596_v44 = vmul.f32 %v2078_v38, %v2078_v38 }
 0x201   : > { %v613_v45 = vmul.f32 0.044715, %v605_v39  ;;  %v606_v46 = vmul.f32 %v598_v41, %v2074_v33 }
 0x202   : > { %v611_v47 = vmul.f32 0.044715, %v603_v42  ;;  %v604_v48 = vmul.f32 %v596_v44, %v2078_v38  ;;  %v1512_v49 = vpop.f32.mrb[4].mxu1 }
 0x203   : > { %v621_v50 = vadd.f32 %v613_v45, %v2068_v27  ;;  %v614_v51 = vmul.f32 0.044715, %v606_v46  ;;  %v2089_v52 = vadd.f32 %v1512_v49, %v481_v25  ;;  %v580_v53 = vpop.f32.mrb[5].mxu1 }
 0x204   : > { %v619_v54 = vadd.f32 %v611_v47, %v2070_v29  ;;  %v612_v56 = vmul.f32 0.044715, %v604_v48  ;;  %v2092_v57 = vadd.f32 %v580_v53, %v481_v25  ;;  %v1513_v60 = vpop.f32.mrb[6].mxu1 }
 0x205   : > { %v629_v61 = vmul.f32 0.7978846, %v621_v50  ;;  %v622_v37 = vadd.f32 %v614_v51, %v2074_v33  ;;  %v601_v1 = vmul.f32 %v2089_v52, %v2089_v52  ;;  %v2097_v40 = vadd.f32 %v1513_v60, %v481_v25  ;;  %v583_v2 = vpop.f32.mrb[7].mxu1 }
 0x206   : > { %v627_v43 = vmul.f32 0.7978846, %v619_v54  ;;  %v620_v12 = vadd.f32 %v612_v56, %v2078_v38  ;;  %v599_v3 = vmul.f32 %v2092_v57, %v2092_v57  ;;  %v2102_v6 = vadd.f32 %v583_v2, %v481_v25 }
 0x207   : > { %1651 = vtanh.f32 %v629_v61  ;;  %v630_v4 = vmul.f32 0.7978846, %v622_v37  ;;  %v609_v8 = vmul.f32 %v601_v1, %v2089_v52  ;;  %v602_v5 = vmul.f32 %v2097_v40, %v2097_v40 }
 0x208   : > { %1653 = vtanh.f32 %v627_v43  ;;  %v628_v9 = vmul.f32 0.7978846, %v620_v12  ;;  %v607_v11 = vmul.f32 %v599_v3, %v2092_v57  ;;  %v600_v10 = vmul.f32 %v2102_v6, %v2102_v6 }
 0x209   : > { %1655 = vtanh.f32 %v630_v4  ;;  %v617_v59 = vmul.f32 0.044715, %v609_v8  ;;  %v610_v55 = vmul.f32 %v602_v5, %v2097_v40 }
 0x20a   : > { %1657 = vtanh.f32 %v628_v9  ;;  %v615_v18 = vmul.f32 0.044715, %v607_v11  ;;  %v608_v13 = vmul.f32 %v600_v10, %v2102_v6 }
 0x20b   : > { %v625_v14 = vadd.f32 %v617_v59, %v2089_v52  ;;  %v618_v17 = vmul.f32 0.044715, %v610_v55  ;;  %v1633_v55 = vld [vmem:[%s2452_s1 + $0xf0] sm:$0xff]  }
 0x20c   : > { %v623_v0 = vadd.f32 %v615_v18, %v2092_v57  ;;  %v616_v7 = vmul.f32 0.044715, %v608_v13  ;;  %v1634_v18 = vld [vmem:[%s2452_s1 + $0xf8] sm:$0xff]   ;;  %v1376_v13 = vld [vmem:[%s2453_s2 + $0x2] sm:$0x1] }
 0x20d   : > { %v633_v21 = vmul.f32 0.7978846, %v625_v14  ;;  %v626_v22 = vadd.f32 %v618_v17, %v2097_v40  ;;  %v694_v14 = vunpack.c.l.bf16 %v1376_v13 }
 0x20e   : > { %v631_v23 = vmul.f32 0.7978846, %v623_v0  ;;  %v624_v24 = vadd.f32 %v616_v7, %v2102_v6 }
 0x20f   : > { %1659 = vtanh.f32 %v633_v21  ;;  %v634_v25 = vmul.f32 0.7978846, %v626_v22  ;;  %v702_v17 = vrot.slane %v694_v14, %v1949_v32 }
 0x210   : > { %1661 = vtanh.f32 %v631_v23  ;;  %v632_v26 = vmul.f32 0.7978846, %v624_v24 }
 0x211   : > { %v1652_v28 = vpop.eup %1651  ;;  %1663 = vtanh.f32 %v634_v25 }
 0x212   : > { %v1654_v30 = vpop.eup %1653  ;;  %v645_v31 = vadd.f32 1.0, %v1652_v28  ;;  %1665 = vtanh.f32 %v632_v26 }
 0x213   : > { %v1656_v34 = vpop.eup %1655  ;;  %v643_v36 = vadd.f32 1.0, %v1654_v30 }
 0x214   : > { %v1658_v39 = vpop.eup %1657  ;;  %v653_v41 = vmul.f32 0.5, %v645_v31  ;;  %v646_v42 = vadd.f32 1.0, %v1656_v34 }
 0x215   : > { %v644_v44 = vadd.f32 1.0, %v1658_v39  ;;  %v651_v45 = vmul.f32 0.5, %v643_v36 }
 0x216   : > { %v654_v46 = vmul.f32 0.5, %v646_v42  ;;  %v661_v49 = vmul.f32 %v653_v41, %v2068_v27 }
 0x217   : > { %v652_v47 = vmul.f32 0.5, %v644_v44  ;;  %v659_v48 = vmul.f32 %v651_v45, %v2070_v29 }
 0x218   : > { %v662_v50 = vmul.f32 %v654_v46, %v2074_v33  ;;  %v2130_v27 = vadd.f32 %v661_v49, %v2014_v35 }
 0x219   : > { %v1660_v51 = vpop.eup %1659  ;;  %v660_v53 = vmul.f32 %v652_v47, %v2078_v38  ;;  %v2124_v37 = vadd.f32 %v659_v48, %v2008_v62 }
 0x21a   : > { %v1662_v54 = vpop.eup %1661  ;;  %v2121_v56 = vadd.f32 %v662_v50, %v2005_v58  ;;  %v649_v60 = vadd.f32 1.0, %v1660_v51 }
 0x21b   : > { %v1664_v61 = vpop.eup %1663  ;;  %v2127_v1 = vadd.f32 %v660_v53, %v2011_v63  ;;  %v647_v29 = vadd.f32 1.0, %v1662_v54 }
 0x21c   : > { %v1666_v2 = vpop.eup %1665  ;;  %v650_v33 = vadd.f32 1.0, %v1664_v61  ;;  %v657_v43 = vmul.f32 0.5, %v649_v60  ;;  %v696_v3 = vpack.c.bf16 %v2121_v56, %v2130_v27 }
 0x21d   : > { %v695_v38 = vpack.c.bf16 %v2127_v1, %v2124_v37  ;;  %v648_v58 = vadd.f32 1.0, %v1666_v2  ;;  %v655_v12 = vmul.f32 0.5, %v647_v29 }
 0x21e   : > { %v658_v62 = vmul.f32 0.5, %v650_v33  ;;  %v665_v8 = vmul.f32 %v657_v43, %v2089_v52 }
 0x21f   : > { %1530 = vmatprep.mubr.bf16.mxu0 %v695_v38  ;;  %v656_v4 = vmul.f32 0.5, %v648_v58  ;;  %v663_v63 = vmul.f32 %v655_v12, %v2092_v57 }
 0x220   : > { %1531 = vmatmul.mubr.bf16.vlgmr.msra.gmra.mrb[8].mxu0 %v696_v3  ;;  %v666_v35 = vmul.f32 %v658_v62, %v2097_v40  ;;  %v2150_v59 = vadd.f32 %v665_v8, %v2034_v20  ;;  %v1630_v20 = vld [vmem:[%s2452_s1 + $0xd8] sm:$0xff]   ;;  %v1631_v40 = vld [vmem:[%s2452_s1 + $0xe0] sm:$0xff]  }
 0x221   : > { %v664_v5 = vmul.f32 %v656_v4, %v2102_v6  ;;  %v2144_v11 = vadd.f32 %v663_v63, %v2028_v16  ;;  %v1628_v16 = vld [vmem:[%s2452_s1 + $0xc8] sm:$0xff]  }
 0x222   : > { %v2141_v9 = vadd.f32 %v666_v35, %v2025_v15  ;;  %v1627_v15 = vld [vmem:[%s2452_s1 + $0xc0] sm:$0xff]   ;;  %v1632_v6 = vld [vmem:[%s2452_s1 + $0xe8] sm:$0xff]  }
 0x223   : > { %v2147_v10 = vadd.f32 %v664_v5, %v2031_v19  ;;  %1538 = vmatprep.subr.bf16.mxu1 %v1627_v15  ;;  %v1629_v19 = vld [vmem:[%s2452_s1 + $0xd0] sm:$0xff]  }
 0x224   : > { %v698_v52 = vpack.c.bf16 %v2141_v9, %v2150_v59  ;;  %1539 = vmatpush3.bf16.msra.mxu1 %v1627_v15 }
 0x225   : > { %v697_v57 = vpack.c.bf16 %v2147_v10, %v2144_v11  ;;  %1540 = vmatprep.subr.bf16.mxu1 %v1628_v16 }
 0x227   : > { %1534 = vmatprep.mubr.bf16.mxu0 %v697_v57 }
 0x228   : > { %1535 = vmatmul.mubr.bf16.gmra.mrb[12].mxu0 %v698_v52  ;;  %1541 = vmatpush3.bf16.msra.mxu1 %v1628_v16 }
 0x229   : > { %1542 = vmatprep.subr.bf16.mxu1 %v1629_v19 }
 0x22c   : > { %1543 = vmatpush3.bf16.msra.mxu1 %v1629_v19 }
 0x22d   : > { %1544 = vmatprep.subr.bf16.mxu1 %v1630_v20 }
 0x230   : > { %1545 = vmatpush3.bf16.msra.mxu1 %v1630_v20 }
 0x231   : > { %1546 = vmatprep.subr.bf16.mxu1 %v1631_v40 }
 0x234   : > { %1547 = vmatpush3.bf16.msra.mxu1 %v1631_v40 }
 0x235   : > { %1548 = vmatprep.subr.bf16.mxu1 %v1632_v6 }
 0x238   : > { %1549 = vmatpush3.bf16.msra.mxu1 %v1632_v6 }
 0x239   : > { %1550 = vmatprep.subr.bf16.mxu1 %v1633_v55 }
 0x23c   : > { %1551 = vmatpush3.bf16.msra.mxu1 %v1633_v55 }
 0x23d   : > { %1552 = vmatprep.subr.bf16.mxu1 %v1634_v18 }
 0x240   : > { %1553 = vmatpush3.bf16.msra.mxu1 %v1634_v18 }
 0x2f3   : > { %v1532_v0 = vpop.f32.mrb[8].mxu0 }
 0x2f4   : > { %v2184_v7 = vadd.f32 %v1532_v0, %v702_v17  ;;  %v785_v21 = vpop.f32.mrb[9].mxu0 }
 0x2f5   : > { %v2186_v22 = vadd.f32 %v785_v21, %v702_v17  ;;  %v1533_v23 = vpop.f32.mrb[10].mxu0 }
 0x2f6   : > { %v818_v24 = vmul.f32 %v2184_v7, %v2184_v7  ;;  %v2190_v25 = vadd.f32 %v1533_v23, %v702_v17  ;;  %v788_v26 = vpop.f32.mrb[11].mxu0 }
 0x2f7   : > { %v816_v28 = vmul.f32 %v2186_v22, %v2186_v22  ;;  %v2194_v30 = vadd.f32 %v788_v26, %v702_v17 }
 0x2f8   : > { %v826_v31 = vmul.f32 %v818_v24, %v2184_v7  ;;  %v819_v34 = vmul.f32 %v2190_v25, %v2190_v25 }
 0x2f9   : > { %v824_v36 = vmul.f32 %v816_v28, %v2186_v22  ;;  %v817_v39 = vmul.f32 %v2194_v30, %v2194_v30 }
 0x2fa   : > { %v834_v41 = vmul.f32 0.044715, %v826_v31  ;;  %v827_v42 = vmul.f32 %v819_v34, %v2190_v25 }
 0x2fb   : > { %v832_v44 = vmul.f32 0.044715, %v824_v36  ;;  %v825_v45 = vmul.f32 %v817_v39, %v2194_v30  ;;  %v1536_v46 = vpop.f32.mrb[12].mxu0 }
 0x2fc   : > { %v842_v47 = vadd.f32 %v834_v41, %v2184_v7  ;;  %v835_v48 = vmul.f32 0.044715, %v827_v42  ;;  %v2205_v49 = vadd.f32 %v1536_v46, %v702_v17  ;;  %v801_v50 = vpop.f32.mrb[13].mxu0 }
 0x2fd   : > { %v840_v51 = vadd.f32 %v832_v44, %v2186_v22  ;;  %v833_v53 = vmul.f32 0.044715, %v825_v45  ;;  %v2208_v54 = vadd.f32 %v801_v50, %v702_v17  ;;  %v1537_v60 = vpop.f32.mrb[14].mxu0 }
 0x2fe   : > { %v850_v61 = vmul.f32 0.7978846, %v842_v47  ;;  %v843_v29 = vadd.f32 %v835_v48, %v2190_v25  ;;  %v822_v2 = vmul.f32 %v2205_v49, %v2205_v49  ;;  %v2213_v33 = vadd.f32 %v1537_v60, %v702_v17  ;;  %v804_v43 = vpop.f32.mrb[15].mxu0 }
 0x2ff   : > { %v848_v38 = vmul.f32 0.7978846, %v840_v51  ;;  %v841_v58 = vadd.f32 %v833_v53, %v2194_v30  ;;  %v820_v12 = vmul.f32 %v2208_v54, %v2208_v54  ;;  %v2218_v3 = vadd.f32 %v804_v43, %v702_v17 }
 0x300   : > { %1667 = vtanh.f32 %v850_v61  ;;  %v851_v62 = vmul.f32 0.7978846, %v843_v29  ;;  %v830_v4 = vmul.f32 %v822_v2, %v2205_v49  ;;  %v823_v63 = vmul.f32 %v2213_v33, %v2213_v33 }
 0x301   : > { %1669 = vtanh.f32 %v848_v38  ;;  %v849_v8 = vmul.f32 0.7978846, %v841_v58  ;;  %v828_v35 = vmul.f32 %v820_v12, %v2208_v54  ;;  %v821_v5 = vmul.f32 %v2218_v3, %v2218_v3 }
 0x302   : > { %1671 = vtanh.f32 %v851_v62  ;;  %v838_v57 = vmul.f32 0.044715, %v830_v4  ;;  %v831_v52 = vmul.f32 %v823_v63, %v2213_v33 }
 0x303   : > { %1673 = vtanh.f32 %v849_v8  ;;  %v836_v15 = vmul.f32 0.044715, %v828_v35  ;;  %v829_v16 = vmul.f32 %v821_v5, %v2218_v3 }
 0x304   : > { %v846_v19 = vadd.f32 %v838_v57, %v2205_v49  ;;  %v839_v20 = vmul.f32 0.044715, %v831_v52 }
 0x305   : > { %v844_v40 = vadd.f32 %v836_v15, %v2208_v54  ;;  %v837_v6 = vmul.f32 0.044715, %v829_v16 }
 0x306   : > { %v854_v55 = vmul.f32 0.7978846, %v846_v19  ;;  %v847_v18 = vadd.f32 %v839_v20, %v2213_v33 }
 0x307   : > { %v852_v13 = vmul.f32 0.7978846, %v844_v40  ;;  %v845_v14 = vadd.f32 %v837_v6, %v2218_v3 }
 0x308   : > { %1675 = vtanh.f32 %v854_v55  ;;  %v855_v17 = vmul.f32 0.7978846, %v847_v18 }
 0x309   : > { %1677 = vtanh.f32 %v852_v13  ;;  %v853_v0 = vmul.f32 0.7978846, %v845_v14 }
 0x30a   : > { %v1668_v21 = vpop.eup %1667  ;;  %1679 = vtanh.f32 %v855_v17 }
 0x30b   : > { %v1670_v23 = vpop.eup %1669  ;;  %v866_v24 = vadd.f32 1.0, %v1668_v21  ;;  %1681 = vtanh.f32 %v853_v0 }
 0x30c   : > { %v1672_v26 = vpop.eup %1671  ;;  %v864_v28 = vadd.f32 1.0, %v1670_v23 }
 0x30d   : > { %v1674_v31 = vpop.eup %1673  ;;  %v874_v34 = vmul.f32 0.5, %v866_v24  ;;  %v867_v36 = vadd.f32 1.0, %v1672_v26 }
 0x30e   : > { %v865_v39 = vadd.f32 1.0, %v1674_v31  ;;  %v872_v41 = vmul.f32 0.5, %v864_v28 }
 0x30f   : > { %v875_v42 = vmul.f32 0.5, %v867_v36  ;;  %v882_v46 = vmul.f32 %v874_v34, %v2184_v7 }
 0x310   : > { %v873_v44 = vmul.f32 0.5, %v865_v39  ;;  %v880_v45 = vmul.f32 %v872_v41, %v2186_v22 }
 0x311   : > { %v883_v47 = vmul.f32 %v875_v42, %v2190_v25  ;;  %v2246_v7 = vadd.f32 %v882_v46, %v2130_v27 }
 0x312   : > { %v1676_v48 = vpop.eup %1675  ;;  %v881_v50 = vmul.f32 %v873_v44, %v2194_v30  ;;  %v2240_v29 = vadd.f32 %v880_v45, %v2124_v37 }
 0x313   : > { %v1678_v51 = vpop.eup %1677  ;;  %v2237_v53 = vadd.f32 %v883_v47, %v2121_v56  ;;  %v870_v60 = vadd.f32 1.0, %v1676_v48 }
 0x314   : > { %v1680_v61 = vpop.eup %1679  ;;  %v2243_v2 = vadd.f32 %v881_v50, %v2127_v1  ;;  %v868_v22 = vadd.f32 1.0, %v1678_v51 }
 0x315   : > { %v1682_v43 = vpop.eup %1681  ;;  %v871_v25 = vadd.f32 1.0, %v1680_v61  ;;  %v878_v38 = vmul.f32 0.5, %v870_v60  ;;  %v917_v12 = vpack.c.bf16 %v2237_v53, %v2246_v7 }
 0x316   : > { %v916_v30 = vpack.c.bf16 %v2243_v2, %v2240_v29  ;;  %v869_v56 = vadd.f32 1.0, %v1682_v43  ;;  %v876_v58 = vmul.f32 0.5, %v868_v22 }
 0x317   : > { %v879_v37 = vmul.f32 0.5, %v871_v25  ;;  %v886_v4 = vmul.f32 %v878_v38, %v2205_v49 }
 0x318   : > { %1554 = vmatprep.mubr.bf16.mxu1 %v916_v30  ;;  %v877_v62 = vmul.f32 0.5, %v869_v56  ;;  %v884_v1 = vmul.f32 %v876_v58, %v2208_v54 }
 0x319   : > { %1555 = vmatmul.mubr.bf16.vlgmr.msra.gmra.mrb[8].mxu1 %v917_v12  ;;  %v887_v27 = vmul.f32 %v879_v37, %v2213_v33  ;;  %v2266_v57 = vadd.f32 %v886_v4, %v2150_v59 }
 0x31a   : > { %v885_v63 = vmul.f32 %v877_v62, %v2218_v3  ;;  %v2260_v35 = vadd.f32 %v884_v1, %v2144_v11 }
 0x31b   : > { %v2257_v8 = vadd.f32 %v887_v27, %v2141_v9  ;;  %v1401_v9 = vld [vmem:[%s2453_s2 + $0x3] sm:$0x1] }
 0x31c   : > { %v2263_v5 = vadd.f32 %v885_v63, %v2147_v10  ;;  %v915_v11 = vunpack.c.l.bf16 %v1401_v9 }
 0x31d   : > { %v919_v49 = vpack.c.bf16 %v2257_v8, %v2266_v57 }
 0x31e   : > { %v918_v54 = vpack.c.bf16 %v2263_v5, %v2260_v35  ;;  %v923_v33 = vrot.slane %v915_v11, %v1949_v32 }
 0x320   : > { %1558 = vmatprep.mubr.bf16.mxu1 %v918_v54 }
 0x321   : > { %1559 = vmatmul.mubr.bf16.gmra.mrb[12].mxu1 %v919_v49 }
 0x3ec   : > { %v1556_v10 = vpop.f32.mrb[8].mxu1 }
 0x3ed   : > { %v2276_v3 = vadd.f32 %v1556_v10, %v923_v33  ;;  %v1006_v59 = vpop.f32.mrb[9].mxu1 }
 0x3ee   : > { %v2278_v52 = vadd.f32 %v1006_v59, %v923_v33  ;;  %v1557_v15 = vpop.f32.mrb[10].mxu1 }
 0x3ef   : > { %v1039_v16 = vmul.f32 %v2276_v3, %v2276_v3  ;;  %v2282_v19 = vadd.f32 %v1557_v15, %v923_v33  ;;  %v1009_v20 = vpop.f32.mrb[11].mxu1 }
 0x3f0   : > { %v1037_v40 = vmul.f32 %v2278_v52, %v2278_v52  ;;  %v2286_v6 = vadd.f32 %v1009_v20, %v923_v33 }
 0x3f1   : > { %v1047_v32 = vmul.f32 %v1039_v16, %v2276_v3  ;;  %v1040_v55 = vmul.f32 %v2282_v19, %v2282_v19 }
 0x3f2   : > { %v1045_v18 = vmul.f32 %v1037_v40, %v2278_v52  ;;  %v1038_v13 = vmul.f32 %v2286_v6, %v2286_v6 }
 0x3f3   : > { %v1055_v14 = vmul.f32 0.044715, %v1047_v32  ;;  %v1048_v17 = vmul.f32 %v1040_v55, %v2282_v19 }
 0x3f4   : > { %v1053_v0 = vmul.f32 0.044715, %v1045_v18  ;;  %v1046_v21 = vmul.f32 %v1038_v13, %v2286_v6  ;;  %v1560_v23 = vpop.f32.mrb[12].mxu1 }
 0x3f5   : > { %v1063_v24 = vadd.f32 %v1055_v14, %v2276_v3  ;;  %v1056_v26 = vmul.f32 0.044715, %v1048_v17  ;;  %v2297_v28 = vadd.f32 %v1560_v23, %v923_v33  ;;  %v1022_v31 = vpop.f32.mrb[13].mxu1 }
 0x3f6   : > { %v1061_v34 = vadd.f32 %v1053_v0, %v2278_v52  ;;  %v1054_v36 = vmul.f32 0.044715, %v1046_v21  ;;  %v2300_v39 = vadd.f32 %v1022_v31, %v923_v33  ;;  %v1561_v41 = vpop.f32.mrb[14].mxu1 }
 0x3f7   : > { %v1071_v42 = vmul.f32 0.7978846, %v1063_v24  ;;  %v1064_v44 = vadd.f32 %v1056_v26, %v2282_v19  ;;  %v1043_v45 = vmul.f32 %v2297_v28, %v2297_v28  ;;  %v2305_v46 = vadd.f32 %v1561_v41, %v923_v33  ;;  %v1025_v47 = vpop.f32.mrb[15].mxu1 }
 0x3f8   : > { %v1069_v48 = vmul.f32 0.7978846, %v1061_v34  ;;  %v1062_v50 = vadd.f32 %v1054_v36, %v2286_v6  ;;  %v1041_v51 = vmul.f32 %v2300_v39, %v2300_v39  ;;  %v2310_v60 = vadd.f32 %v1025_v47, %v923_v33 }
 0x3f9   : > { %v1072_v61 = vmul.f32 0.7978846, %v1064_v44  ;;  %v1051_v22 = vmul.f32 %v1043_v45, %v2297_v28  ;;  %v1044_v43 = vmul.f32 %v2305_v46, %v2305_v46  ;;  %1683 = vtanh.f32 %v1071_v42 }
 0x3fa   : > { %v1070_v25 = vmul.f32 0.7978846, %v1062_v50  ;;  %v1049_v38 = vmul.f32 %v1041_v51, %v2300_v39  ;;  %v1042_v30 = vmul.f32 %v2310_v60, %v2310_v60  ;;  %1685 = vtanh.f32 %v1069_v48 }
 0x3fb   : > { %v1059_v56 = vmul.f32 0.044715, %v1051_v22  ;;  %v1052_v58 = vmul.f32 %v1044_v43, %v2305_v46  ;;  %1687 = vtanh.f32 %v1072_v61 }
 0x3fc   : > { %v1057_v12 = vmul.f32 0.044715, %v1049_v38  ;;  %v1050_v37 = vmul.f32 %v1042_v30, %v2310_v60  ;;  %1689 = vtanh.f32 %v1070_v25 }
 0x3fd   : > { %v1067_v62 = vadd.f32 %v1059_v56, %v2297_v28  ;;  %v1060_v1 = vmul.f32 0.044715, %v1052_v58 }
 0x3fe   : > { %v1065_v4 = vadd.f32 %v1057_v12, %v2300_v39  ;;  %v1058_v27 = vmul.f32 0.044715, %v1050_v37 }
 0x3ff   : > { %v1075_v63 = vmul.f32 0.7978846, %v1067_v62  ;;  %v1068_v54 = vadd.f32 %v1060_v1, %v2305_v46 }
 0x400   : > { %v1073_v49 = vmul.f32 0.7978846, %v1065_v4  ;;  %v1066_v9 = vadd.f32 %v1058_v27, %v2310_v60 }
 0x401   : > { %v1076_v11 = vmul.f32 0.7978846, %v1068_v54  ;;  %1691 = vtanh.f32 %v1075_v63 }
 0x402   : > { %v1074_v33 = vmul.f32 0.7978846, %v1066_v9  ;;  %1693 = vtanh.f32 %v1073_v49 }
 0x403   : > { %v1684_v10 = vpop.eup %1683  ;;  %1695 = vtanh.f32 %v1076_v11 }
 0x404   : > { %v1686_v59 = vpop.eup %1685  ;;  %v1087_v15 = vadd.f32 1.0, %v1684_v10  ;;  %1697 = vtanh.f32 %v1074_v33 }
 0x405   : > { %v1688_v16 = vpop.eup %1687  ;;  %v1085_v20 = vadd.f32 1.0, %v1686_v59 }
 0x406   : > { %v1690_v40 = vpop.eup %1689  ;;  %v1095_v32 = vmul.f32 0.5, %v1087_v15  ;;  %v1088_v55 = vadd.f32 1.0, %v1688_v16 }
 0x407   : > { %v1093_v18 = vmul.f32 0.5, %v1085_v20  ;;  %v1086_v13 = vadd.f32 1.0, %v1690_v40 }
 0x408   : > { %v1103_v14 = vmul.f32 %v1095_v32, %v2276_v3  ;;  %v1096_v17 = vmul.f32 0.5, %v1088_v55 }
 0x409   : > { %v1101_v0 = vmul.f32 %v1093_v18, %v2278_v52  ;;  %v1094_v21 = vmul.f32 0.5, %v1086_v13 }
 0x40a   : > { %v1111_v23 = vadd.f32 %v1103_v14, %v2246_v7  ;;  %v1104_v24 = vmul.f32 %v1096_v17, %v2282_v19 }
 0x40b   : > { %v1692_v26 = vpop.eup %1691  ;;  %v1109_v31 = vadd.f32 %v1101_v0, %v2240_v29  ;;  %v1102_v34 = vmul.f32 %v1094_v21, %v2286_v6 }
 0x40c   : > { %v1694_v36 = vpop.eup %1693  ;;  %1123 = vadd.xlane.f32.xlu1 %v1111_v23  ;;  %v1091_v41 = vadd.f32 1.0, %v1692_v26  ;;  %v1112_v45 = vadd.f32 %v1104_v24, %v2237_v53 }
 0x40d   : > { %v1696_v42 = vpop.eup %1695  ;;  %1119 = vadd.xlane.f32.xlu0 %v1109_v31  ;;  %v1089_v44 = vadd.f32 1.0, %v1694_v36  ;;  %v1110_v47 = vadd.f32 %v1102_v34, %v2243_v2 }
 0x40e   : > { %v1698_v3 = vpop.eup %1697  ;;  %v1092_v52 = vadd.f32 1.0, %v1696_v42  ;;  %v1099_v19 = vmul.f32 0.5, %v1091_v41 }
 0x40f   : > { %v1097_v7 = vmul.f32 0.5, %v1089_v44  ;;  %v1090_v48 = vadd.f32 1.0, %v1698_v3 }
 0x410   : > { %1125 = vadd.xlane.f32.xlu1 %v1112_v45  ;;  %v1100_v50 = vmul.f32 0.5, %v1092_v52  ;;  %v1107_v22 = vmul.f32 %v1099_v19, %v2297_v28 }
 0x411   : > { %1121 = vadd.xlane.f32.xlu0 %v1110_v47  ;;  %v1105_v29 = vmul.f32 %v1097_v7, %v2300_v39  ;;  %v1098_v6 = vmul.f32 0.5, %v1090_v48  ;;  %v1410_v48 = vld [vmem:[%s2454_s3] ss:$0 sm:$0xff] }
 0x412   : > { %v1108_v2 = vmul.f32 %v1100_v50, %v2305_v46  ;;  %v1115_v43 = vadd.f32 %v1107_v22, %v2266_v57 }
 0x413   : > { %v1113_v51 = vadd.f32 %v1105_v29, %v2260_v35  ;;  %v1106_v61 = vmul.f32 %v1098_v6, %v2310_v60 }
 0x414   : > { %v1116_v25 = vadd.f32 %v1108_v2, %v2257_v8 }
 0x415   : > { %1127 = vadd.xlane.f32.xlu0 %v1113_v51  ;;  %v1114_v53 = vadd.f32 %v1106_v61, %v2263_v5 }
 0x417   : > { %1129 = vadd.xlane.f32.xlu1 %v1114_v53 }
 0x419   : > { %1131 = vadd.xlane.f32.xlu0 %v1115_v43 }
 0x41b   : > { %1133 = vadd.xlane.f32.xlu1 %v1116_v25 }
 0x499   : > { %v1124_v39 = vpop.xlane.xlu1 %1123 }
 0x49a   : > { %v1138_v38 = vmul.f32 0.0078125, %v1124_v39  ;;  %v1120_v30 = vpop.xlane.xlu0 %1119 }
 0x49b   : > { %v1136_v35 = vmul.f32 0.0078125, %v1120_v30 }
 0x49c   : > { %v2340_v56 = vsub.f32 %v1111_v23, %v1138_v38 }
 0x49d   : > { %v1126_v60 = vpop.xlane.xlu1 %1125  ;;  %v2342_v28 = vsub.f32 %v1109_v31, %v1136_v35 }
 0x49e   : > { %v1139_v58 = vmul.f32 0.0078125, %v1126_v60  ;;  %v1122_v5 = vpop.xlane.xlu0 %1121  ;;  %v1154_v46 = vmul.f32 %v2340_v56, %v2340_v56 }
 0x49f   : > { %v1137_v12 = vmul.f32 0.0078125, %v1122_v5  ;;  %v1152_v1 = vmul.f32 %v2342_v28, %v2342_v28 }
 0x4a0   : > { %v2346_v57 = vsub.f32 %v1112_v45, %v1139_v58  ;;  %1164 = vadd.xlane.f32.xlu0 %v1154_v46 }
 0x4a1   : > { %v2348_v8 = vsub.f32 %v1110_v47, %v1137_v12 }
 0x4a2   : > { %v1128_v37 = vpop.xlane.xlu0 %1127  ;;  %v1155_v62 = vmul.f32 %v2346_v57, %v2346_v57 }
 0x4a3   : > { %v1140_v4 = vmul.f32 0.0078125, %v1128_v37  ;;  %v1153_v9 = vmul.f32 %v2348_v8, %v2348_v8 }
 0x4a4   : > { %1166 = vadd.xlane.f32.xlu1 %v1155_v62  ;;  %v1130_v27 = vpop.xlane.xlu1 %1129  ;;  %1160 = vadd.xlane.f32.xlu0 %v1152_v1 }
 0x4a5   : > { %v2354_v63 = vsub.f32 %v1113_v51, %v1140_v4  ;;  %v1141_v54 = vmul.f32 0.0078125, %v1130_v27  ;;  %v1411_v51 = vld [vmem:[%s2455_s4] ss:$0 sm:$0xff] }
 0x4a6   : > { %v1132_v49 = vpop.xlane.xlu0 %1131 }
 0x4a7   : > { %v2358_v11 = vsub.f32 %v1114_v53, %v1141_v54  ;;  %v1142_v33 = vmul.f32 0.0078125, %v1132_v49  ;;  %v1156_v10 = vmul.f32 %v2354_v63, %v2354_v63 }
 0x4a8   : > { %v1134_v59 = vpop.xlane.xlu1 %1133  ;;  %1162 = vadd.xlane.f32.xlu1 %v1153_v9 }
 0x4a9   : > { %v2362_v15 = vsub.f32 %v1115_v43, %v1142_v33  ;;  %v1143_v16 = vmul.f32 0.0078125, %v1134_v59  ;;  %1168 = vadd.xlane.f32.xlu0 %v1156_v10  ;;  %v1157_v20 = vmul.f32 %v2358_v11, %v2358_v11 }
 0x4ab   : > { %v2366_v40 = vsub.f32 %v1116_v25, %v1143_v16  ;;  %v1158_v32 = vmul.f32 %v2362_v15, %v2362_v15 }
 0x4ac   : > { %1170 = vadd.xlane.f32.xlu1 %v1157_v20 }
 0x4ad   : > { %1172 = vadd.xlane.f32.xlu0 %v1158_v32  ;;  %v1159_v55 = vmul.f32 %v2366_v40, %v2366_v40 }
 0x4b0   : > { %1174 = vadd.xlane.f32.xlu1 %v1159_v55 }
 0x52d   : > { %v1165_v18 = vpop.xlane.xlu0 %1164 }
 0x52e   : > { %v1178_v13 = vmul.f32 0.0078125, %v1165_v18 }
 0x530   : > { %v1186_v14 = vadd.f32 1e-05, %v1178_v13 }
 0x531   : > { %v1167_v17 = vpop.xlane.xlu1 %1166  ;;  %v1161_v0 = vpop.xlane.xlu0 %1160 }
 0x532   : > { %1699 = vrsqrt.f32 %v1186_v14  ;;  %v1179_v21 = vmul.f32 0.0078125, %v1167_v17  ;;  %v1176_v23 = vmul.f32 0.0078125, %v1161_v0 }
 0x534   : > { %v1187_v24 = vadd.f32 1e-05, %v1179_v21  ;;  %v1184_v26 = vadd.f32 1e-05, %v1176_v23 }
 0x535   : > { %v1163_v31 = vpop.xlane.xlu1 %1162 }
 0x536   : > { %1701 = vrsqrt.f32 %v1187_v24  ;;  %v1177_v34 = vmul.f32 0.0078125, %v1163_v31  ;;  %v1169_v36 = vpop.xlane.xlu0 %1168 }
 0x537   : > { %1703 = vrsqrt.f32 %v1184_v26  ;;  %v1180_v41 = vmul.f32 0.0078125, %v1169_v36 }
 0x538   : > { %v1185_v42 = vadd.f32 1e-05, %v1177_v34 }
 0x539   : > { %v1188_v44 = vadd.f32 1e-05, %v1180_v41  ;;  %v1171_v3 = vpop.xlane.xlu1 %1170 }
 0x53a   : > { %1705 = vrsqrt.f32 %v1185_v42  ;;  %v1181_v45 = vmul.f32 0.0078125, %v1171_v3  ;;  %v1173_v52 = vpop.xlane.xlu0 %1172 }
 0x53b   : > { %1707 = vrsqrt.f32 %v1188_v44  ;;  %v1182_v47 = vmul.f32 0.0078125, %v1173_v52 }
 0x53c   : > { %v1700_v7 = vpop.eup %1699  ;;  %v1189_v19 = vadd.f32 1e-05, %v1181_v45 }
 0x53d   : > { %v1202_v29 = vmul.f32 %v1700_v7, %v2340_v56  ;;  %v1190_v6 = vadd.f32 1e-05, %v1182_v47  ;;  %v1175_v50 = vpop.xlane.xlu1 %1174 }
 0x53e   : > { %1709 = vrsqrt.f32 %v1189_v19  ;;  %v1183_v61 = vmul.f32 0.0078125, %v1175_v50 }
 0x53f   : > { %v1216_v22 = vmul.f32 %v1410_v48, %v1202_v29  ;;  %1711 = vrsqrt.f32 %v1190_v6 }
 0x540   : > { %v1702_v53 = vpop.eup %1701  ;;  %v1191_v2 = vadd.f32 1e-05, %v1183_v61 }
 0x541   : > { %v1704_v43 = vpop.eup %1703  ;;  %v1230_v25 = vadd.f32 %v1411_v51, %v1216_v22  ;;  %v1203_v39 = vmul.f32 %v1702_v53, %v2346_v57 }
 0x542   : > { %v1200_v38 = vmul.f32 %v1704_v43, %v2342_v28  ;;  %1713 = vrsqrt.f32 %v1191_v2 }
 0x543   : > { %1238 = vst [vmem:[%s2384_s8 + $0x10] sm:$0xff] %v1230_v25  ;;  %v1217_v30 = vmul.f32 %v1410_v48, %v1203_v39 }
 0x544   : > { %v1706_v35 = vpop.eup %1705  ;;  %v1214_v56 = vmul.f32 %v1410_v48, %v1200_v38 }
 0x545   : > { %v1708_v60 = vpop.eup %1707  ;;  %v1231_v58 = vadd.f32 %v1411_v51, %v1217_v30  ;;  %v1201_v5 = vmul.f32 %v1706_v35, %v2348_v8 }
 0x546   : > { %v1228_v46 = vadd.f32 %v1411_v51, %v1214_v56  ;;  %v1204_v12 = vmul.f32 %v1708_v60, %v2354_v63 }
 0x547   : > { %1239 = vst [vmem:[%s2384_s8 + $0x18] sm:$0xff] %v1231_v58  ;;  %v1215_v28 = vmul.f32 %v1410_v48, %v1201_v5 }
 0x548   : > { %v1710_v57 = vpop.eup %1709  ;;  %1236 = vst [vmem:[%s2384_s8] sm:$0xff] %v1228_v46  ;;  %v1218_v37 = vmul.f32 %v1410_v48, %v1204_v12 }
 0x549   : > { %v1712_v62 = vpop.eup %1711  ;;  %v1229_v1 = vadd.f32 %v1411_v51, %v1215_v28  ;;  %v1205_v4 = vmul.f32 %v1710_v57, %v2358_v11 }
 0x54a   : > { %v1232_v27 = vadd.f32 %v1411_v51, %v1218_v37  ;;  %v1206_v8 = vmul.f32 %v1712_v62, %v2362_v15 }
 0x54b   : > { %1237 = vst [vmem:[%s2384_s8 + $0x8] sm:$0xff] %v1229_v1  ;;  %v1219_v54 = vmul.f32 %v1410_v48, %v1205_v4 }
 0x54c   : > { %v1714_v63 = vpop.eup %1713  ;;  %1240 = vst [vmem:[%s2384_s8 + $0x20] sm:$0xff] %v1232_v27  ;;  %v1220_v49 = vmul.f32 %v1410_v48, %v1206_v8 }
 0x54d   : > { %v1233_v9 = vadd.f32 %v1411_v51, %v1219_v54  ;;  %v1207_v33 = vmul.f32 %v1714_v63, %v2366_v40 }
 0x54e   : > { %v1234_v10 = vadd.f32 %v1411_v51, %v1220_v49 }
 0x54f   : > { %1241 = vst [vmem:[%s2384_s8 + $0x28] sm:$0xff] %v1233_v9  ;;  %v1221_v59 = vmul.f32 %v1410_v48, %v1207_v33 }
 0x550   : > { %1242 = vst [vmem:[%s2384_s8 + $0x30] sm:$0xff] %v1234_v10 }
 0x551   : > { %v1235_v11 = vadd.f32 %v1411_v51, %v1221_v59 }
 0x553   : > { %1243 = vst [vmem:[%s2384_s8 + $0x38] sm:$0xff] %v1235_v11 }
 0x554   : > { %1728 = shalt.err (!%p1725_p3)
}
 0x555   : > { %s1729_s23 = scalar_lea.hbm %s2403_s13, 1024  ;;  %s1733_s30 = scalar_lea.hbm %s2456_s5, 2048 }
 0x556   : > { %p1730_p4 = scmp.ne.s32.totalorder %s2403_s13, %s1729_s23  ;;  %p1734_p9 = scmp.lt.u32.totalorder %s2403_s13, %s2456_s5 }
 0x557   : > { %p1735_p10 = scmp.lt.u32.totalorder %s1733_s30, %s1729_s23  ;;  %p1737_p12 = scmp.lt.u32.totalorder %s1729_s23, %s2403_s13 }
 0x558   : > { %p1731_p7 = pnand %p1730_p4, %p1850_p5 }
 0x559   : > { %p1736_p11 = por %p1735_p10, %p1734_p9 }
 0x55a   : > { %p1732_p8 = pneg %p1731_p7 }
 0x55b   : > { %p1738_p13 = por %p1737_p12, %p1736_p11 }
 0x55d   : > { %p1739_p0 = pnand %p1738_p13, %p1732_p8 }
 0x55f   : > { %1742 = shalt.err (!%p1739_p0)
}
 0x560   : > { %s1780_s8 = smov 128   ;;  %s1781_s9 = smov 8  }
 0x561   : > { %1562 = dma.vmem_to_hbm [thread:$0]  (%p1850_p5), %s2405_s10, 1024, %s2403_s13, %s2410_s14, %s1780_s8, %s1780_s8, %s1781_s9  }
 0x562 PF: > { %p1568_p1 = scmp.ge.s32.totalorder %s1777_s21, 2  ;;  %s1273_s11 = sand.u32 1, %s1765_s18  }
 0x563   : > { %s1274_s12 = scalar_lea.sflag [#allocation3], %s1273_s11 }
 0x564   : > { %p1565_p2 = pnand %p1568_p1, %p1854_p6 }
 0x566   : > { %1760 = dma.done.wait (!%p1565_p2), %s1274_s12, 1024  }
 0x567   : > { %1762 = vsyncadd (!%p1565_p2), %s1274_s12, 4294966272  ;;  %p15_p3 = scmp.ge.s32.totalorder %s1837_s24, 4   ;;  %s2459_s18 = smov %s1769_s19 }
 0x568   : > { %s2460_s19 = smov %s1773_s20  ;;  %s2461_s20 = smov %s1848_s27 }
 0x569   : > { %s2462_s21 = smov %s1837_s24  ;;  %17 = sbr.rel (!%p15_p3) target bundleno = 3 (0x3), region = 81 }
 0x570   :  { %1279 = vsyncpa [#allocation3], 1 }
 0x571   :  { %1281 = vsyncpa [#allocation3 + $0x1], 1 }

</bundles_post_ra>
